<compile_context>
chip_gen: v7x
topology: tpu7x:2x2x1
jax: 0.10.0
libtpu: 0.0.40
codegen_flags: <defaults>
</compile_context>

<pallas_src>
import jax
import jax.numpy as jnp
import numpy as np
from jax.experimental import pallas as pl
from jax.experimental.pallas import tpu as pltpu


def _cdiv(a, b):
    return -(-a // b)


def _round_up(x, m):
    return _cdiv(x, m) * m


# ----------------------------------------------------------------------------
# Pallas kernel
# ----------------------------------------------------------------------------
def _make_kernel(bn, L, Dp, Cp, Kmax, left_pad, right_pad, P,
                 col_valid_lens, need_mask, C, nK):
    inv_L = 1.0 / L

    def kernel(feat_ref, w_ref, b_ref, wa_ref, out_ref):
        feat = feat_ref[...]                                     # (bn, L, Dp) bf16

        # aspect vector: mean over sequence (f32 accumulation), projected by the
        # per-K-replicated fc_aspect weight -> already tiled to (bn, Cp).
        aspect = jnp.sum(feat.astype(jnp.float32), axis=1) * inv_L     # (bn, Dp)
        asp = jnp.dot(aspect.astype(jnp.bfloat16), wa_ref[...],
                      preferred_element_type=jnp.float32)        # (bn, Cp) f32

        # zero-pad the sequence once, in registers, in bf16.
        parts = []
        if left_pad > 0:
            parts.append(jnp.zeros((bn, left_pad, Dp), jnp.bfloat16))
        parts.append(feat)
        if right_pad > 0:
            parts.append(jnp.zeros((bn, right_pad, Dp), jnp.bfloat16))
        featp = jnp.concatenate(parts, axis=1) if len(parts) > 1 else feat

        # fused im2col over ALL kernel sizes: one wide bf16 matmul, f32 acc.
        win = jnp.concatenate(
            [featp[:, t:t + P, :] for t in range(Kmax)], axis=-1)  # (bn, P, Kmax*Dp)
        acc = jnp.dot(win.reshape(bn * P, Kmax * Dp), w_ref[...],
                      preferred_element_type=jnp.float32)          # (bn*P, 2*Cp)
        acc = acc.reshape(bn, P, 2 * Cp) + b_ref[...].reshape(1, 1, 2 * Cp)

        x = jnp.tanh(acc[:, :, :Cp])                               # conv1 gate
        y = jnp.maximum(acc[:, :, Cp:] + asp[:, None, :], 0.0)     # conv2 gate + aspect
        gated = x * y                                              # (bn, P, Cp)

        if need_mask:
            # even kernel sizes have L_out < P: exclude their tail rows from
            # the max-pool (pad columns stay valid; they are identically 0).
            pos = jax.lax.broadcasted_iota(jnp.int32, (P, 1), 0)
            cols = [jnp.broadcast_to(pos < lv, (P, C)) for lv in col_valid_lens]
            if Cp > nK * C:
                cols.append(jnp.ones((P, Cp - nK * C), jnp.bool_))
            valid = jnp.concatenate(cols, axis=1)                  # (P, Cp)
            gated = jnp.where(valid[None], gated, jnp.float32(-1e30))

        out_ref[...] = jnp.max(gated, axis=1)[None]                # (1, bn, Cp)

    return kernel


# ----------------------------------------------------------------------------
# Parameter packing (13 tensors -> 3 lane-aligned kernel inputs)
# ----------------------------------------------------------------------------
def pack_params(params, kernel_sizes, D, C, Dp, Cp, Kmax, max_pad):
    nK = len(kernel_sizes)
    W = jnp.zeros((Kmax * Dp, 2 * Cp), jnp.float32)
    b = jnp.zeros((1, 2 * Cp), jnp.float32)
    wa = jnp.zeros((Dp, Cp), jnp.float32)
    ba = params["fc_aspect_b"]                                     # (1, C)
    for i, K in enumerate(kernel_sizes):
        off = max_pad - (K - 1) // 2                               # tap row offset
        w1 = params[f"conv1_w_{K}"]                                # (K, D, C)
        w2 = params[f"conv2_w_{K}"]
        for t in range(K):
            r0 = (off + t) * Dp
            W = W.at[r0:r0 + D, i * C:(i + 1) * C].set(w1[t])
            W = W.at[r0:r0 + D, Cp + i * C:Cp + (i + 1) * C].set(w2[t])
        b = b.at[:, i * C:(i + 1) * C].set(params[f"conv1_b_{K}"])
        b = b.at[:, Cp + i * C:Cp + (i + 1) * C].set(params[f"conv2_b_{K}"] + ba)
        wa = wa.at[:D, i * C:(i + 1) * C].set(params["fc_aspect_w"])
    return W.astype(jnp.bfloat16), b, wa.astype(jnp.bfloat16)


# ----------------------------------------------------------------------------
# Wrapper
# ----------------------------------------------------------------------------
def cnn_gate_aspect_forward(feature, params, kernel_sizes):
    feature = feature.astype(jnp.float32)
    N, L, D = feature.shape
    kernel_sizes = tuple(int(k) for k in kernel_sizes)
    nK = len(kernel_sizes)
    C = params["fc_aspect_w"].shape[1]
    Kmax = max(kernel_sizes)

    pads = [(K - 1) // 2 for K in kernel_sizes]
    max_pad = max(pads)
    louts = [L + 2 * p - K + 1 for K, p in zip(kernel_sizes, pads)]
    P = max(louts)                              # rows computed per batch element
    need_mask = any(lo != P for lo in louts)    # only for even kernel sizes
    left_pad = max_pad
    right_pad = max(max_pad, P + Kmax - 1 - L - max_pad)
    Lp = L + left_pad + right_pad

    Dp = _round_up(D, 128)                      # lane-aligned embed dim
    Cp = _round_up(nK * C, 128)                 # lane-aligned per-gate output width

    conv_w, conv_b, wa = pack_params(params, kernel_sizes, D, C, Dp, Cp, Kmax, max_pad)

    # ----- VMEM budget & batch tiling (generation-aware) -----
    try:
        phys_vmem = int(getattr(pltpu.get_tpu_info(), "vmem_capacity_bytes", 0)
                        or (64 << 20))
    except Exception:
        phys_vmem = 64 << 20
    vmem_limit = int(min(phys_vmem, 128 << 20) // 2)   # 64MB on v5e/v6e, 32MB on v7x
    work_budget = vmem_limit // 2

    per_row = (2 * L * Dp * 2          # bf16 feature block, double-buffered
               + Lp * Dp * 2           # padded bf16 copy
               + L * Dp * 4            # f32 cast for the aspect mean
               + P * Kmax * Dp * 2     # bf16 im2col window
               + P * 2 * Cp * 4        # f32 matmul accumulator
               + 2 * P * Cp * 4)       # f32 gate activations
    bn_cap = max(1, work_budget // per_row)
    bn = int(max(1, min(bn_cap, _cdiv(512, P))))       # ~512 MXU rows per step
    if N > 1:
        bn = min(bn, _cdiv(N, 2))                      # >=2 grid steps (v7x: 2 TCs)
    G = _cdiv(N, bn)
    Npad = G * bn

    # bf16 feature, batch padded to the grid, embed dim padded to Dp.
    feat = jnp.pad(feature.astype(jnp.bfloat16),
                   ((0, Npad - N), (0, 0), (0, Dp - D)))

    kernel = _make_kernel(bn, L, Dp, Cp, Kmax, left_pad, right_pad, P,
                          louts, need_mask, C, nK)

    pooled = pl.pallas_call(
        kernel,
        out_shape=jax.ShapeDtypeStruct((G, bn, Cp), jnp.float32),
        grid_spec=pltpu.PrefetchScalarGridSpec(
            num_scalar_prefetch=0,
            grid=(G,),
            in_specs=[
                pl.BlockSpec((bn, L, Dp), lambda b: (b, 0, 0)),
                pl.BlockSpec((Kmax * Dp, 2 * Cp), lambda b: (0, 0)),
                pl.BlockSpec((1, 2 * Cp), lambda b: (0, 0)),
                pl.BlockSpec((Dp, Cp), lambda b: (0, 0)),
            ],
            out_specs=pl.BlockSpec((1, bn, Cp), lambda b: (b, 0, 0)),
        ),
        compiler_params=pltpu.CompilerParams(
            dimension_semantics=("parallel",),
            vmem_limit_bytes=vmem_limit),
    )(feat, conv_w, conv_b, wa)

    # Lane-dense kernel output; slice off padding, 1-wide fc_reg stays outside.
    x0 = pooled.reshape(Npad, Cp)[:N, :nK * C]
    return x0 @ params["fc_reg_w"] + params["fc_reg_b"]


# ----------------------------------------------------------------------------
# Pure-JAX reference (same math).  operand_dtype=bf16 mimics the kernel's bf16
# feature DMA + MXU operand quantization (f32 accumulation) for a tight check.
# ----------------------------------------------------------------------------
def reference_forward(feature, params, kernel_sizes, operand_dtype=jnp.float32):
    feature = feature.astype(jnp.float32)
    N, L, D = feature.shape
    featq = feature.astype(operand_dtype)
    aspect = jnp.sum(featq.astype(jnp.float32), axis=1) / L
    asp_proj = jnp.dot(aspect.astype(operand_dtype),
                       params["fc_aspect_w"].astype(operand_dtype),
                       preferred_element_type=jnp.float32) + params["fc_aspect_b"]

    pooled = []
    for K in kernel_sizes:
        pad = (K - 1) // 2
        L_out = L + 2 * pad - K + 1
        featp = jnp.pad(featq, ((0, 0), (pad, pad), (0, 0)))
        w1 = params[f"conv1_w_{K}"].astype(operand_dtype)
        w2 = params[f"conv2_w_{K}"].astype(operand_dtype)
        c1 = sum(jnp.einsum("nld,dc->nlc", featp[:, t:t + L_out, :], w1[t],
                            preferred_element_type=jnp.float32)
                 for t in range(K)) + params[f"conv1_b_{K}"]
        c2 = sum(jnp.einsum("nld,dc->nlc", featp[:, t:t + L_out, :], w2[t],
                            preferred_element_type=jnp.float32)
                 for t in range(K)) + params[f"conv2_b_{K}"]
        x = jnp.tanh(c1)
        y = jax.nn.relu(c2 + asp_proj[:, None, :])
        pooled.append(jnp.max(x * y, axis=1))
    cat = jnp.concatenate(pooled, axis=-1)
    return cat @ params["fc_reg_w"] + params["fc_reg_b"]


# ----------------------------------------------------------------------------
# Deterministic parameter construction (synthetic, not a checkpoint load)
# ----------------------------------------------------------------------------
def init_params(key, kernel_sizes, embed_dim, last_kernel_num):
    D, C = embed_dim, last_kernel_num
    params = {}
    for K in kernel_sizes:
        key, k1, k2, k3, k4 = jax.random.split(key, 5)
        params[f"conv1_w_{K}"] = 0.1 * jax.random.normal(k1, (K, D, C), jnp.float32)
        params[f"conv1_b_{K}"] = 0.1 * jax.random.normal(k2, (1, C), jnp.float32)
        params[f"conv2_w_{K}"] = 0.1 * jax.random.normal(k3, (K, D, C), jnp.float32)
        params[f"conv2_b_{K}"] = 0.1 * jax.random.normal(k4, (1, C), jnp.float32)
    key, ka, kb, kc, kd = jax.random.split(key, 5)
    params["fc_aspect_w"] = 0.1 * jax.random.normal(ka, (D, C), jnp.float32)
    params["fc_aspect_b"] = 0.1 * jax.random.normal(kb, (1, C), jnp.float32)
    nK = len(kernel_sizes)
    params["fc_reg_w"] = 0.1 * jax.random.normal(kc, (nK * C, 1), jnp.float32)
    params["fc_reg_b"] = 0.1 * jax.random.normal(kd, (1, 1), jnp.float32)
    return params


if __name__ == "__main__":
    # Small shapes consistent with the module's forward():
    #   feature: (batch=2, seq_len=8, embed_dim=32)
    #   kernel_sizes=[3, 5], last_kernel_num=16  -> x0: (2, 32), logit: (2, 1)
    kernel_sizes = [3, 5]
    N, L, D, C = 2, 8, 32, 16

    key = jax.random.PRNGKey(0)
    key, kf = jax.random.split(key)
    feature = jax.random.normal(kf, (N, L, D), jnp.float32)
    params = init_params(key, kernel_sizes, D, C)

    logit = cnn_gate_aspect_forward(feature, params, kernel_sizes)
    logit = jax.block_until_ready(logit)

    # (1) tight check against a reference using the same bf16 feature / operand casts
    ref_bf16 = reference_forward(feature, params, kernel_sizes,
                                 operand_dtype=jnp.bfloat16)
    np.testing.assert_allclose(np.asarray(logit), np.asarray(ref_bf16),
                               rtol=2e-3, atol=2e-3)

    # (2) semantic check against the all-f32 module math (bf16 operands => looser tol)
    ref_f32 = reference_forward(feature, params, kernel_sizes,
                                operand_dtype=jnp.float32)
    np.testing.assert_allclose(np.asarray(logit), np.asarray(ref_f32),
                               rtol=5e-2, atol=5e-2)

    print("KERNEL_OK")
</pallas_src>

<mosaic_0001>
module attributes {stable_mosaic.version = 11 : i64} {
  func.func @kernel(%arg0: i32, %arg1: memref<1x8x128xbf16, #tpu.memory_space<vmem>>, %arg2: memref<640x256xbf16, #tpu.memory_space<vmem>>, %arg3: memref<1x256xf32, #tpu.memory_space<vmem>>, %arg4: memref<128x128xbf16, #tpu.memory_space<vmem>>, %arg5: memref<1x1x128xf32, #tpu.memory_space<vmem>>) attributes {dimension_semantics = [#tpu.dimension_semantics<parallel>], iteration_bounds = array<i64: 2>, scalar_prefetch = 0 : i64, scratch_operands = 0 : i64, tpu.core_type = #tpu.core_type<tc>, window_params = [{transform_indices = @transform_0, window_bounds = array<i64: 1, 8, 128>}, {pipeline_mode = #tpu.pipeline_mode<synchronous>, transform_indices = @transform_1, window_bounds = array<i64: 640, 256>}, {pipeline_mode = #tpu.pipeline_mode<synchronous>, transform_indices = @transform_2, window_bounds = array<i64: 1, 256>}, {pipeline_mode = #tpu.pipeline_mode<synchronous>, transform_indices = @transform_3, window_bounds = array<i64: 128, 128>}, {transform_indices = @transform_4, window_bounds = array<i64: 1, 1, 128>}]} {
    %c0 = arith.constant 0 : index
    %c0_0 = arith.constant 0 : index
    %c0_1 = arith.constant 0 : index
    %0 = vector.load %arg1[%c0, %c0_0, %c0_1] : memref<1x8x128xbf16, #tpu.memory_space<vmem>>, vector<1x8x128xbf16>
    %1 = arith.extf %0 : vector<1x8x128xbf16> to vector<1x8x128xf32>
    %cst = arith.constant dense<0.000000e+00> : vector<1x128xf32>
    %2 = vector.multi_reduction <add>, %1, %cst [1] : vector<1x8x128xf32> to vector<1x128xf32>
    %cst_2 = arith.constant 1.250000e-01 : f32
    %3 = vector.broadcast %cst_2 : f32 to vector<1x128xf32>
    %4 = arith.mulf %2, %3 : vector<1x128xf32>
    %5 = arith.truncf %4 : vector<1x128xf32> to vector<1x128xbf16>
    %c0_3 = arith.constant 0 : index
    %c0_4 = arith.constant 0 : index
    %6 = vector.load %arg4[%c0_3, %c0_4] : memref<128x128xbf16, #tpu.memory_space<vmem>>, vector<128x128xbf16>
    %cst_5 = arith.constant dense<0.000000e+00> : vector<1x128xf32>
    %7 = tpu.matmul %5, %6, %cst_5 {dimension_numbers = #tpu.dot_dimension_numbers<[1], [0], [0], [1], [0, 0, 1, 1], [], []>} : vector<1x128xbf16>, vector<128x128xbf16>, vector<1x128xf32> -> vector<1x128xf32>
    %cst_6 = arith.constant 0.000000e+00 : bf16
    %8 = vector.broadcast %cst_6 : bf16 to vector<1x2x128xbf16>
    %cst_7 = arith.constant 0.000000e+00 : bf16
    %9 = vector.broadcast %cst_7 : bf16 to vector<1x2x128xbf16>
    %10 = tpu.concatenate %8, %0, %9 in 1 : vector<1x2x128xbf16>, vector<1x8x128xbf16>, vector<1x2x128xbf16> -> vector<1x12x128xbf16>
    %11 = vector.extract_strided_slice %10 {offsets = [0, 0, 0], sizes = [1, 8, 128], strides = [1, 1, 1]} : vector<1x12x128xbf16> to vector<1x8x128xbf16>
    %12 = vector.extract_strided_slice %10 {offsets = [0, 1, 0], sizes = [1, 8, 128], strides = [1, 1, 1]} : vector<1x12x128xbf16> to vector<1x8x128xbf16>
    %13 = vector.extract_strided_slice %10 {offsets = [0, 2, 0], sizes = [1, 8, 128], strides = [1, 1, 1]} : vector<1x12x128xbf16> to vector<1x8x128xbf16>
    %14 = vector.extract_strided_slice %10 {offsets = [0, 3, 0], sizes = [1, 8, 128], strides = [1, 1, 1]} : vector<1x12x128xbf16> to vector<1x8x128xbf16>
    %15 = vector.extract_strided_slice %10 {offsets = [0, 4, 0], sizes = [1, 8, 128], strides = [1, 1, 1]} : vector<1x12x128xbf16> to vector<1x8x128xbf16>
    %16 = tpu.concatenate %11, %12, %13, %14, %15 in 2 : vector<1x8x128xbf16>, vector<1x8x128xbf16>, vector<1x8x128xbf16>, vector<1x8x128xbf16>, vector<1x8x128xbf16> -> vector<1x8x640xbf16>
    %17 = vector.shape_cast %16 : vector<1x8x640xbf16> to vector<8x640xbf16>
    %c0_8 = arith.constant 0 : index
    %c0_9 = arith.constant 0 : index
    %18 = vector.load %arg2[%c0_8, %c0_9] : memref<640x256xbf16, #tpu.memory_space<vmem>>, vector<640x256xbf16>
    %cst_10 = arith.constant dense<0.000000e+00> : vector<8x256xf32>
    %19 = tpu.matmul %17, %18, %cst_10 {dimension_numbers = #tpu.dot_dimension_numbers<[1], [0], [0], [1], [0, 0, 1, 1], [], []>} : vector<8x640xbf16>, vector<640x256xbf16>, vector<8x256xf32> -> vector<8x256xf32>
    %20 = vector.shape_cast %19 : vector<8x256xf32> to vector<1x8x256xf32>
    %c0_11 = arith.constant 0 : index
    %c0_12 = arith.constant 0 : index
    %21 = vector.load %arg3[%c0_11, %c0_12] : memref<1x256xf32, #tpu.memory_space<vmem>>, vector<1x256xf32>
    %22 = vector.shape_cast %21 : vector<1x256xf32> to vector<1x1x256xf32>
    %23 = vector.broadcast %22 : vector<1x1x256xf32> to vector<1x8x256xf32>
    %24 = arith.addf %20, %23 : vector<1x8x256xf32>
    %25 = vector.extract_strided_slice %24 {offsets = [0, 0, 0], sizes = [1, 8, 128], strides = [1, 1, 1]} : vector<1x8x256xf32> to vector<1x8x128xf32>
    %26 = math.tanh %25 : vector<1x8x128xf32>
    %27 = vector.extract_strided_slice %24 {offsets = [0, 0, 128], sizes = [1, 8, 128], strides = [1, 1, 1]} : vector<1x8x256xf32> to vector<1x8x128xf32>
    %28 = vector.shape_cast %7 : vector<1x128xf32> to vector<1x1x128xf32>
    %29 = vector.broadcast %28 : vector<1x1x128xf32> to vector<1x8x128xf32>
    %30 = arith.addf %27, %29 : vector<1x8x128xf32>
    %cst_13 = arith.constant 0.000000e+00 : f32
    %31 = vector.broadcast %cst_13 : f32 to vector<1x8x128xf32>
    %32 = arith.maximumf %30, %31 : vector<1x8x128xf32>
    %33 = arith.mulf %26, %32 : vector<1x8x128xf32>
    %cst_14 = arith.constant dense<0xFF800000> : vector<1x128xf32>
    %34 = vector.multi_reduction <maximumf>, %33, %cst_14 [1] : vector<1x8x128xf32> to vector<1x128xf32>
    %35 = vector.shape_cast %34 : vector<1x128xf32> to vector<1x1x128xf32>
    %c0_15 = arith.constant 0 : index
    %c0_16 = arith.constant 0 : index
    %c0_17 = arith.constant 0 : index
    %36 = vector.load %arg5[%c0_15, %c0_16, %c0_17] : memref<1x1x128xf32, #tpu.memory_space<vmem>>, vector<1x1x128xf32>
    tpu.vector_store %arg5[%c0_15, %c0_16, %c0_17], %35 {strides = array<i32>} : memref<1x1x128xf32, #tpu.memory_space<vmem>>, vector<1x1x128xf32>,
    return
  }
  func.func @transform_0(%arg0: i32) -> (i32, i32, i32) {
    %c0_i32 = arith.constant 0 : i32
    %c0_i32_0 = arith.constant 0 : i32
    %c0_i32_1 = arith.constant 0 : i32
    return %arg0, %c0_i32, %c0_i32_0 : i32, i32, i32
  }
  func.func @transform_1(%arg0: i32) -> (i32, i32) {
    %c0_i32 = arith.constant 0 : i32
    %c0_i32_0 = arith.constant 0 : i32
    %c0_i32_1 = arith.constant 0 : i32
    return %c0_i32, %c0_i32_0 : i32, i32
  }
  func.func @transform_2(%arg0: i32) -> (i32, i32) {
    %c0_i32 = arith.constant 0 : i32
    %c0_i32_0 = arith.constant 0 : i32
    %c0_i32_1 = arith.constant 0 : i32
    return %c0_i32, %c0_i32_0 : i32, i32
  }
  func.func @transform_3(%arg0: i32) -> (i32, i32) {
    %c0_i32 = arith.constant 0 : i32
    %c0_i32_0 = arith.constant 0 : i32
    %c0_i32_1 = arith.constant 0 : i32
    return %c0_i32, %c0_i32_0 : i32, i32
  }
  func.func @transform_4(%arg0: i32) -> (i32, i32, i32) {
    %c0_i32 = arith.constant 0 : i32
    %c0_i32_0 = arith.constant 0 : i32
    %c0_i32_1 = arith.constant 0 : i32
    return %arg0, %c0_i32, %c0_i32_0 : i32, i32, i32
  }
}

</mosaic_0001>

<bundles_post_ra>
// kernel: tpu_custom_call.1
= control target key start
LH: loop header
LB: loop body
LE: loop exit
PB: predicated region body
PF: predicated region fallthrough
CT: control target
= control target key end

     0   :  { %9 = vsyncpa [#allocation3], 0  ;;  %s1902_s0 = inlined_call_operand.hbm [shape: bf16[2,8,128], index: 0, kind: input, shape index: {}]   ;;  %s1903_s1 = inlined_call_operand.hbm [shape: bf16[640,256], index: 1, kind: input, shape index: {}]   ;;  %s1904_s2 = inlined_call_operand.vmem [shape: f32[1,256], index: 2, kind: input, shape index: {}]   ;;  %s1905_s3 = inlined_call_operand.hbm [shape: bf16[128,128], index: 3, kind: input, shape index: {}]   ;;  %s1906_s4 = inlined_call_operand.hbm [shape: f32[2,1,128], index: 4, kind: output, shape index: {}]  }
   0x1   :  { %11 = vsyncpa [#allocation3 + $0x1], 0 }
   0x2   :  { %12 = vsyncpa [#allocation6], 0 }
   0x3   :  { %13 = vsyncpa [#allocation4], 0 }
   0x4   :  { %15 = vsyncpa [#allocation4 + $0x1], 0  ;;  %s1645_s15 = smov 0   ;;  %s1647_s16 = smov 0  }
   0x5   :  { %s1649_s17 = smov 0   ;;  %s1651_s18 = smov 0  }
   0x6 LB: > { %s1666_s19 = sadd.s32 4294967295, %s1607_s18   ;;  %s1113_s20 = sadd.s32 4294967294, %s1607_s18   ;;  %s1607_s18 = sphi %s1651_s18, %s1926_s18   ;;  %s1603_s17 = sphi %s1649_s17, %s1925_s17   ;;  %s1599_s16 = sphi %s1647_s16, %s1924_s16   ;;  %s1595_s15 = sphi %s1645_s15, %s1923_s15  }
   0x7   : > { %p41_p0 = scmp.ne.s32.totalorder %s1599_s16, %s1595_s15  ;;  %p1907_p1 = scmp.eq.s32.totalorder %s1666_s19, 0 }
   0x8   : > { %p134_p3 = scmp.eq.s32.totalorder %s1113_s20, 1  ;;  %p1114_p5 = scmp.ge.s32.totalorder %s1607_s18, 1 }
   0x9   : > { %p1675_p4 = por %p1907_p1, %p41_p0  ;;  %p141_p7 = scmp.lt.s32.totalorder %s1607_s18, 3 }
   0xa   : > { %p1680_p6 = por %p134_p3, %p41_p0  ;;  %s1609_s24 = smov [#allocation5]  }
   0xb   : > { %s1910_s21 = scalar_select %p1675_p4, 1, 0 }
   0xc   : > { %s1911_s22 = scalar_select %p1680_p6, 1, 0 }
   0xd   : > { %p1685_p8 = pnand %p1114_p5, %p141_p7  ;;  %s153_s25 = sshll.u32 %s1609_s24, 4  ;;  %s1689_s25 = int_to_ptr.vmem [resolvable:$true] %s153_s25 }
   0xe   : > { %s1610_s27 = smov [#allocation7]   ;;  %s1451_s5 = scalar_lea.hbm %s1903_s1, 10240 }
   0xf   : > { %p1258_p9 = pneg %p1685_p8  ;;  %s169_s28 = sshll.u32 %s1610_s27, 4  ;;  %s1700_s28 = int_to_ptr.vmem [resolvable:$true] %s169_s28 }
  0x10   : > { %p1452_p12 = scmp.ne.s32.totalorder %s1903_s1, %s1451_s5  ;;  %p1458_p5 = scmp.lt.u32.totalorder %s1451_s5, %s1903_s1 }
  0x11   : > { %p1696_p11 = pnand %p1258_p9, %p1907_p1 }
  0x13   : > { %p1453_p13 = pneg %p1696_p11 }
  0x15   : > { %p1454_p0 = pnand %p1453_p13, %p1452_p12 }
  0x17   : > { %p1455_p3 = pneg %p1454_p0 }
  0x19   : > { %p1460_p7 = pnand %p1458_p5, %p1455_p3 }
  0x1b   : > { %1463 = shalt.err (!%p1460_p7)
}
  0x1c   : > { %s1464_s10 = scalar_lea.vmem %s1689_s25, 10240  ;;  %p1472_p2 = scmp.lt.s32.totalorder %s1689_s25, %s1689_s25 }
  0x1d   : > { %p1465_p9 = scmp.ne.s32.totalorder %s1689_s25, %s1464_s10  ;;  %p1473_p12 = scmp.lt.s32.totalorder %s1464_s10, %s1464_s10 }
  0x1f   : > { %p1467_p10 = pnand %p1465_p9, %p1453_p13  ;;  %p1474_p0 = por %p1473_p12, %p1472_p2 }
  0x21   : > { %p1468_p1 = pneg %p1467_p10 }
  0x23   : > { %p1475_p6 = pnand %p1474_p0, %p1468_p1 }
  0x25   : > { %1478 = shalt.err (!%p1475_p6)
}
  0x26   : > { %s1611_s11 = smov 128   ;;  %s1612_s12 = smov 8  }
  0x27   : > { %1261 = dma.hbm_to_vmem [thread:$0]  (!%p1696_p11), %s1903_s1, 10240, %s1689_s25, [#allocation6], %s1611_s11, %s1611_s11, %s1612_s12  }
  0x28   : > { %s1479_s27 = scalar_lea.hbm %s1905_s3, 1024 }
  0x29   : > { %p1480_p2 = scmp.ne.s32.totalorder %s1905_s3, %s1479_s27  ;;  %p1486_p10 = scmp.lt.u32.totalorder %s1479_s27, %s1905_s3 }
  0x2b   : > { %p1482_p1 = pnand %p1480_p2, %p1453_p13 }
  0x2d   : > { %p1483_p6 = pneg %p1482_p1 }
  0x2f   : > { %p1488_p3 = pnand %p1486_p10, %p1483_p6 }
  0x31   : > { %1491 = shalt.err (!%p1488_p3)
}
  0x32   : > { %s1492_s25 = scalar_lea.vmem %s1700_s28, 1024  ;;  %p1500_p12 = scmp.lt.s32.totalorder %s1700_s28, %s1700_s28 }
  0x33   : > { %p1493_p5 = scmp.ne.s32.totalorder %s1700_s28, %s1492_s25  ;;  %p1501_p0 = scmp.lt.s32.totalorder %s1492_s25, %s1492_s25 }
  0x35   : > { %p1495_p7 = pnand %p1493_p5, %p1453_p13  ;;  %p1502_p2 = por %p1501_p0, %p1500_p12 }
  0x37   : > { %p1496_p9 = pneg %p1495_p7 }
  0x39   : > { %p1503_p1 = pnand %p1502_p2, %p1496_p9 }
  0x3b   : > { %1506 = shalt.err (!%p1503_p1)
}
  0x3c   : > { %s1613_s7 = smov 64   ;;  %s1614_s8 = smov 4  }
  0x3d   : > { %1264 = dma.hbm_to_vmem [thread:$0]  (!%p1696_p11), %s1905_s3, 1024, %s1700_s28, [#allocation6], %s1613_s7, %s1613_s7, %s1614_s8  }
  0x3e   : > { %s1755_s11 = sadd.s32 1, %s1607_s18   ;;  %s28_s13 = sadd.s32 1, %s1603_s17 }
  0x3f   : > { %s25_s12 = ssub.s32 %s1607_s18, %s1755_s11  ;;  %p35_p6 = scmp.ne.s32.totalorder %s1603_s17, %s1599_s16 }
  0x40   : > { %p26_p13 = scmp.eq.s32.totalorder %s25_s12, 0  ;;  %p36_p10 = scmp.eq.s32.totalorder %s1607_s18, 0 }
  0x41   : > { %p1914_p5 = scmp.eq.s32.totalorder %s1666_s19, 1  ;;  %p1275_p9 = scmp.lt.s32.totalorder %s1607_s18, 2 }
  0x42   : > { %s1764_s14 = scalar_select %p26_p13, %s1603_s17, %s28_s13  }
  0x43   : > { %p37_p3 = por %p36_p10, %p35_p6  ;;  %p1768_p7 = por %p1914_p5, %p35_p6 }
  0x44   : > { %s183_s26 = sand.u32 1, %s1603_s17   ;;  %s1119_s28 = sshll.u32 %s1607_s18, 6 }
  0x45   : > { %s1915_s20 = scalar_select %p1768_p7, 1, 0 }
  0x46   : > { %s1118_s24 = sshll.u32 %s183_s26, 2  ;;  %s1778_s30 = scalar_lea.hbm %s1902_s0, %s1119_s28 }
  0x47   : > { %s187_s5 = scalar_lea.vmem [#allocation2], %s1118_s24  ;;  %p1782_p11 = pnand %p1275_p9, %p37_p3 }
  0x48   : > { %s194_s6 = sshll.u32 %s187_s5, 4  ;;  %s184_s7 = scalar_lea.sflag [#allocation3], %s183_s26  ;;  %s1780_s6 = int_to_ptr.vmem [resolvable:$true] %s194_s6 }
  0x49   : > { %s1507_s8 = scalar_lea.hbm %s1778_s30, 64  ;;  %p1509_p0 = pneg %p1782_p11 }
  0x4a   : > { %p1508_p12 = scmp.ne.s32.totalorder %s1778_s30, %s1507_s8  ;;  %s1512_s12 = scalar_lea.hbm %s1902_s0, 128 }
  0x4b   : > { %p1513_p13 = scmp.lt.u32.totalorder %s1778_s30, %s1902_s0  ;;  %p1514_p6 = scmp.lt.u32.totalorder %s1512_s12, %s1507_s8 }
  0x4c   : > { %p1510_p2 = pnand %p1509_p0, %p1508_p12  ;;  %p1516_p3 = scmp.lt.u32.totalorder %s1507_s8, %s1778_s30 }
  0x4d   : > { %p1515_p10 = por %p1514_p6, %p1513_p13 }
  0x4e   : > { %p1511_p1 = pneg %p1510_p2 }
  0x4f   : > { %p1517_p5 = por %p1516_p3, %p1515_p10 }
  0x51   : > { %p1518_p9 = pnand %p1517_p5, %p1511_p1 }
  0x53   : > { %1521 = shalt.err (!%p1518_p9)
}
  0x54   : > { %s1522_s26 = scalar_lea.vmem %s1780_s6, 64  ;;  %s1615_s28 = smov [#allocation2]  }
  0x55   : > { %p1523_p12 = scmp.ne.s32.totalorder %s1780_s6, %s1522_s26  ;;  %s1527_s27 = sshll.u32 %s1615_s28, 4  ;;  %s1528_s27 = int_to_ptr.vmem [resolvable:$false] %s1527_s27 }
  0x56   : > { %s1529_s29 = scalar_lea.vmem %s1528_s27, 128  ;;  %p1530_p4 = scmp.lt.s32.totalorder %s1780_s6, %s1528_s27 }
  0x57   : > { %p1525_p2 = pnand %p1523_p12, %p1509_p0  ;;  %p1531_p13 = scmp.lt.s32.totalorder %s1529_s29, %s1522_s26 }
  0x59   : > { %p1526_p7 = pneg %p1525_p2  ;;  %p1532_p6 = por %p1531_p13, %p1530_p4 }
  0x5b   : > { %p1533_p10 = pnand %p1532_p6, %p1526_p7 }
  0x5d   : > { %1536 = shalt.err (!%p1533_p10)
}
  0x5e   : > { %1268 = dma.hbm_to_vmem [thread:$0]  (!%p1782_p11), %s1778_s30, 64, %s1780_s6, %s184_s7  }
  0x5f   : > { %203 = sbr.rel (%p1685_p8) target bundleno = 460 (0x1cc), region = 36  ;;  %s1814_s5 = sand.u32 (!%p1685_p8), 1, %s1599_s16  }
  0x60   : > { %s1121_s8 = sshll.u32 (!%p1685_p8), %s1814_s5, 2  ;;  %s206_s9 = scalar_lea.sflag (!%p1685_p8), [#allocation3], %s1814_s5 }
  0x61   : > { %s1818_s10 = scalar_lea.vmem (!%p1685_p8), [#allocation2], %s1121_s8  ;;  %p1917_p4 = scmp.ne.s32.totalorder (!%p1685_p8), %s1910_s21, 0 }
  0x66   : > { %1582 = dma.done.wait (%p1917_p4), %s206_s9, 64  }
  0x67   : > { %1584 = vsyncadd (%p1917_p4), %s206_s9, 4294967232  ;;  %p1918_p7 = scmp.eq.s32.totalorder %s1666_s19, 0 }
  0x69   : > { %1586 = dma.done.wait (%p1918_p7), [#allocation6], 11264   ;;  %p1919_p8 = pmov %p1918_p7 }
  0x6a   : > { %v1616_v0 = vmov 0.0   ;;  %vm1617_vm0 = vmmov 0   ;;  %v1320_v1 = vld [vmem:[#allocation7] sm:$0xff]   ;;  %v1324_v4 = vld [vmem:[#allocation7 + $0x8] sm:$0xff]   ;;  %v1325_v5 = vld [vmem:[#allocation5 + $0x14] ss:$8 sps:$4 sm:$0xff]  }
  0x6b   : > { %1588 = vsyncadd (%p1919_p8), [#allocation6], 4294956032  ;;  %1226 = vmatprep.subr.bf16.mxu0 %v1616_v0  ;;  %1242 = vmatprep.mubr.msk.bf16.mxu0 %vm1617_vm0, %v1616_v0  ;;  %v1321_v2 = vld [vmem:[#allocation5 + $0x4] ss:$8 sps:$4 sm:$0xff]   ;;  %v1323_v3 = vld [vmem:[#allocation5] ss:$8 sps:$4 sm:$0xff]  }
  0x6c   : > { %1227 = vmatpush3.bf16.msra.mxu0 %v1320_v1  ;;  %863 = vmatprep.subr.bf16.mxu1 %v1321_v2  ;;  %v1327_v6 = vld [vmem:[#allocation5 + $0x10] ss:$8 sps:$4 sm:$0xff]   ;;  %v1329_v8 = vld [vmem:[#allocation5 + $0x24] ss:$8 sps:$4 sm:$0xff]   ;;  %v1331_v9 = vld [vmem:[#allocation5 + $0x20] ss:$8 sps:$4 sm:$0xff]  }
  0x6d   : > { %1228 = vmatprep.subr.bf16.mxu0 %v1616_v0  ;;  %864 = vmatpush1.bf16.msra.mxu1 %v1323_v3  ;;  %v1328_v7 = vld [vmem:[#allocation7 + $0x10] sm:$0xff]   ;;  %v1332_v11 = vld [vmem:[#allocation7 + $0x18] sm:$0xff]   ;;  %v1337_v13 = vld [vmem:[#allocation5 + $0x44] ss:$8 sps:$4 sm:$0xff]   ;;  %vm360_vm1 = vcmask 1040384   ;;  %vm364_vm2 = vcmask 1044480  }
  0x6e   : > { %865 = vmatprep.subr.bf16.mxu1 %v1325_v5  ;;  %v1333_v10 = vld [vmem:[#allocation5 + $0x34] ss:$8 sps:$4 sm:$0xff]   ;;  %v1335_v12 = vld [vmem:[#allocation5 + $0x30] ss:$8 sps:$4 sm:$0xff]   ;;  %v1336_v14 = vld [vmem:[#allocation7 + $0x20] sm:$0xff]   ;;  %s1214_s30 = sshll.u32 %s1666_s19, 4 }
  0x6f   : > { %v1339_v15 = vld [vmem:[#allocation5 + $0x40] ss:$8 sps:$4 sm:$0xff]   ;;  %v1341_v16 = vld [vmem:[#allocation5 + $0x54] ss:$8 sps:$4 sm:$0xff]   ;;  %v1343_v21 = vld [vmem:[#allocation5 + $0x50] ss:$8 sps:$4 sm:$0xff]   ;;  %s1858_s13 = scalar_lea.hbm %s1906_s4, %s1214_s30 }
  0x70   : > { %1229 = vmatpush3.bf16.msra.mxu0 %v1324_v4  ;;  %v1340_v17 = vld [vmem:[#allocation7 + $0x28] sm:$0xff]   ;;  %v242_v18 = vld [vmem:[%s1818_s10] sm:$0xf]  ;;  %v1344_v24 = vld [vmem:[#allocation7 + $0x30] sm:$0xff]   ;;  %s240_s6 = scalar_lea.vmem [#allocation8], %s1814_s5  ;;  %s1016_s24 = scalar_lea.sflag [#allocation4], %s1814_s5 }
  0x71   : > { %1230 = vmatprep.subr.bf16.mxu0 %v1616_v0  ;;  %866 = vmatpush1.bf16.msra.mxu1 %v1327_v6  ;;  %v243_v19 = vunpack.c.l.bf16 %v242_v18  ;;  %v1132_v20 = vcombine.low %v242_v18, %v242_v18  ;;  %v1345_v22 = vld [vmem:[#allocation5 + $0x64] ss:$8 sps:$4 sm:$0xff]   ;;  %v1347_v27 = vld [vmem:[#allocation5 + $0x60] ss:$8 sps:$4 sm:$0xff]   ;;  %v1349_v29 = vld [vmem:[#allocation5 + $0x74] ss:$8 sps:$4 sm:$0xff]  }
  0x72   : > { %867 = vmatprep.subr.bf16.mxu1 %v1329_v8  ;;  %v1348_v31 = vld [vmem:[#allocation7 + $0x38] sm:$0xff]   ;;  %v1354_v34 = vld [vmem:[#allocation5 + $0x104] ss:$8 sps:$4 sm:$0xff]   ;;  %v1357_v44 = vld [vmem:[#allocation5 + $0x80] ss:$8 sps:$4 sm:$0xff]   ;;  %s1028_s25 = sshll.u32 %s240_s6, 4  ;;  %s1860_s25 = int_to_ptr.vmem [resolvable:$true] %s1028_s25 }
  0x73   : > { %v244_v23 = vrot.slane %v243_v19, 4  ;;  %v359_v25 = vrot.slane %v1132_v20, 7  ;;  %v1351_v36 = vld [vmem:[#allocation5 + $0x70] ss:$8 sps:$4 sm:$0xff]   ;;  %v1355_v39 = vld [vmem:[#allocation5 + $0x84] ss:$8 sps:$4 sm:$0xff]  }
  0x74   : > { %1231 = vmatpush3.bf16.msra.mxu0 %v1328_v7  ;;  %v1361_v47 = vld [vmem:[#allocation5 + $0x94] ss:$8 sps:$4 sm:$0xff]   ;;  %v1352_v48 = vld [vmem:[#allocation5 + $0x100] ss:$8 sps:$4 sm:$0xff]   ;;  %v1363_v52 = vld [vmem:[#allocation5 + $0x90] ss:$8 sps:$4 sm:$0xff]  }
  0x75   : > { %1232 = vmatprep.subr.bf16.mxu0 %v1616_v0  ;;  %868 = vmatpush1.bf16.msra.mxu1 %v1331_v9  ;;  %v245_v26 = vadd.f32 %v244_v23, %v243_v19  ;;  %v1837_v28 = vsel %vm360_vm1, 0, %v359_v25  ;;  %v1360_v51 = vld [vmem:[#allocation5 + $0x114] ss:$8 sps:$4 sm:$0xff]   ;;  %v1367_v53 = vld [vmem:[#allocation5 + $0xa4] ss:$8 sps:$4 sm:$0xff]   ;;  %s1537_s26 = scalar_lea.vmem %s1860_s25, 16 }
  0x76   : > { %869 = vmatprep.subr.bf16.mxu1 %v1333_v10  ;;  %v1841_v32 = vsel %vm364_vm2, %v1837_v28, 0  ;;  %v1358_v54 = vld [vmem:[#allocation5 + $0x110] ss:$8 sps:$4 sm:$0xff]   ;;  %v1366_v55 = vld [vmem:[#allocation5 + $0x124] ss:$8 sps:$4 sm:$0xff]   ;;  %p1538_p11 = scmp.ne.s32.totalorder %s1860_s25, %s1537_s26  ;;  %p1920_p0 = scmp.ne.s32.totalorder %s1915_s20, 0 }
  0x77   : > { %v246_v30 = vrot.slane %v245_v26, 2  ;;  %v369_v35 = vshll.u32 %v1841_v32, 16  ;;  %v367_v37 = vshrl.u32 %v1841_v32, 16  ;;  %v1369_v56 = vld [vmem:[#allocation5 + $0xa0] ss:$8 sps:$4 sm:$0xff]   ;;  %s1619_s19 = smov [#allocation8]  }
  0x78   : > { %1233 = vmatpush3.bf16.msra.mxu0 %v1332_v11  ;;  %v1373_v57 = vld [vmem:[#allocation5 + $0xb4] ss:$8 sps:$4 sm:$0xff]   ;;  %v1364_v58 = vld [vmem:[#allocation5 + $0x120] ss:$8 sps:$4 sm:$0xff]   ;;  %v1375_v60 = vld [vmem:[#allocation5 + $0xb0] ss:$8 sps:$4 sm:$0xff]   ;;  %p1539_p1 = pnand %p1538_p11, %p1920_p0 }
  0x79   : > { %1234 = vmatprep.subr.bf16.mxu0 %v1616_v0  ;;  %870 = vmatpush1.bf16.msra.mxu1 %v1335_v12  ;;  %v247_v33 = vadd.f32 %v246_v30, %v245_v26  ;;  %v371_v40 = vrot.slane %v369_v35, 1  ;;  %v377_v42 = vrot.slane %v367_v37, 1  ;;  %v378_v43 = vrot.slane %v369_v35, 2  ;;  %v1372_v59 = vld [vmem:[#allocation5 + $0x134] ss:$8 sps:$4 sm:$0xff]   ;;  %s1541_s28 = sshll.u32 %s1619_s19, 4  ;;  %s1542_s28 = int_to_ptr.vmem [resolvable:$false] %s1541_s28 }
  0x7a   : > { %871 = vmatprep.subr.bf16.mxu1 %v1337_v13  ;;  %v1379_v61 = vld [vmem:[#allocation5 + $0xc4] ss:$8 sps:$4 sm:$0xff]   ;;  %v1370_v62 = vld [vmem:[#allocation5 + $0x130] ss:$8 sps:$4 sm:$0xff]   ;;  %v1385_v1 = vld [vmem:[#allocation5 + $0xd4] ss:$8 sps:$4 sm:$0xff]   ;;  %p1540_p3 = pneg %p1539_p1  ;;  %p1544_p5 = scmp.lt.s32.totalorder %s1860_s25, %s1542_s28 }
  0x7b   : > { %v248_v38 = vrot.slane %v247_v33, 1  ;;  %v372_v45 = vor.u32 %v371_v40, %v367_v37  ;;  %v379_v49 = vor.u32 %v378_v43, %v377_v42  ;;  %v1378_v63 = vld [vmem:[#allocation5 + $0x144] ss:$8 sps:$4 sm:$0xff]   ;;  %v1376_v2 = vld [vmem:[#allocation5 + $0x140] ss:$8 sps:$4 sm:$0xff]   ;;  %s1543_s27 = scalar_lea.vmem %s1542_s28, 32 }
  0x7c   : > { %1235 = vmatpush3.bf16.msra.mxu0 %v1336_v14  ;;  %v1384_v3 = vld [vmem:[#allocation5 + $0x154] ss:$8 sps:$4 sm:$0xff]   ;;  %v1387_v4 = vld [vmem:[#allocation5 + $0xd0] ss:$8 sps:$4 sm:$0xff]   ;;  %v1391_v5 = vld [vmem:[#allocation5 + $0xe4] ss:$8 sps:$4 sm:$0xff]   ;;  %p1545_p9 = scmp.lt.s32.totalorder %s1543_s27, %s1537_s26 }
  0x7d   : > { %1236 = vmatprep.subr.bf16.mxu0 %v1616_v0  ;;  %872 = vmatpush1.bf16.msra.mxu1 %v1339_v15  ;;  %v249_v41 = vadd.f32 %v248_v38, %v247_v33  ;;  %v1382_v6 = vld [vmem:[#allocation5 + $0x150] ss:$8 sps:$4 sm:$0xff]   ;;  %v1390_v7 = vld [vmem:[#allocation5 + $0x164] ss:$8 sps:$4 sm:$0xff]   ;;  %v1393_v8 = vld [vmem:[#allocation5 + $0xe0] ss:$8 sps:$4 sm:$0xff]  }
  0x7e   : > { %873 = vmatprep.subr.bf16.mxu1 %v1341_v16  ;;  %895 = vmatprep.mubr.bf16.mxu1 %v372_v45  ;;  %v1397_v9 = vld [vmem:[#allocation5 + $0xf4] ss:$8 sps:$4 sm:$0xff]   ;;  %v1388_v10 = vld [vmem:[#allocation5 + $0x160] ss:$8 sps:$4 sm:$0xff]   ;;  %v1399_v12 = vld [vmem:[#allocation5 + $0xf0] ss:$8 sps:$4 sm:$0xff]   ;;  %p1546_p12 = por %p1545_p9, %p1544_p5 }
  0x7f   : > { %v250_v46 = vmul.f32 0.125, %v249_v41  ;;  %v1396_v11 = vld [vmem:[#allocation5 + $0x174] ss:$8 sps:$4 sm:$0xff]   ;;  %v1406_v13 = vld [vmem:[#allocation5 + $0x204] ss:$8 sps:$4 sm:$0xff]  }
  0x80   : > { %1237 = vmatpush3.bf16.msra.mxu0 %v1340_v17  ;;  %v1394_v14 = vld [vmem:[#allocation5 + $0x170] ss:$8 sps:$4 sm:$0xff]   ;;  %v1403_v15 = vld [vmem:[#allocation5 + $0x184] ss:$8 sps:$4 sm:$0xff]   ;;  %v1404_v16 = vld [vmem:[#allocation5 + $0x200] ss:$8 sps:$4 sm:$0xff]   ;;  %p1547_p2 = pnand %p1546_p12, %p1540_p3 }
  0x81   : > { %1238 = vmatprep.subr.bf16.mxu0 %v1616_v0  ;;  %874 = vmatpush1.bf16.msra.mxu1 %v1343_v21  ;;  %v251_v50 = vpack.c.bf16 %v250_v46, %v250_v46  ;;  %v1412_v17 = vld [vmem:[#allocation5 + $0x214] ss:$8 sps:$4 sm:$0xff]   ;;  %v1401_v18 = vld [vmem:[#allocation5 + $0x180] ss:$8 sps:$4 sm:$0xff]   ;;  %v1410_v20 = vld [vmem:[#allocation5 + $0x210] ss:$8 sps:$4 sm:$0xff]  }
  0x82   : > { %875 = vmatprep.subr.bf16.mxu1 %v1345_v22  ;;  %v1409_v19 = vld [vmem:[#allocation5 + $0x194] ss:$8 sps:$4 sm:$0xff]   ;;  %v1618_v21 = vmov 0   ;;  %v1418_v22 = vld [vmem:[#allocation5 + $0x224] ss:$8 sps:$4 sm:$0xff]  }
  0x83   : > { %v1407_v23 = vld [vmem:[#allocation5 + $0x190] ss:$8 sps:$4 sm:$0xff]   ;;  %v1416_v25 = vld [vmem:[#allocation5 + $0x220] ss:$8 sps:$4 sm:$0xff]   ;;  %v1424_v26 = vld [vmem:[#allocation5 + $0x234] ss:$8 sps:$4 sm:$0xff]  }
  0x84   : > { %1239 = vmatpush3.bf16.msra.mxu0 %v1344_v24  ;;  %v1415_v24 = vld [vmem:[#allocation5 + $0x1a4] ss:$8 sps:$4 sm:$0xff]   ;;  %v1436_v35 = vld [vmem:[#allocation5 + $0x254] ss:$8 sps:$4 sm:$0xff]   ;;  %v1434_v38 = vld [vmem:[#allocation5 + $0x250] ss:$8 sps:$4 sm:$0xff]  }
  0x85   : > { %1240 = vmatprep.subr.bf16.mxu0 %v1616_v0  ;;  %876 = vmatpush1.bf16.msra.mxu1 %v1347_v27  ;;  %v1381_v0 = vld [vmem:[#allocation5 + $0xc0] ss:$8 sps:$4 sm:$0xff]   ;;  %v1430_v30 = vld [vmem:[#allocation5 + $0x244] ss:$8 sps:$4 sm:$0xff]   ;;  %v1433_v37 = vld [vmem:[#allocation5 + $0x1d4] ss:$8 sps:$4 sm:$0xff]  }
  0x86   : > { %877 = vmatprep.subr.bf16.mxu1 %v1349_v29  ;;  %v1413_v27 = vld [vmem:[#allocation5 + $0x1a0] ss:$8 sps:$4 sm:$0xff]   ;;  %v1421_v29 = vld [vmem:[#allocation5 + $0x1b4] ss:$8 sps:$4 sm:$0xff]   ;;  %v1427_v33 = vld [vmem:[#allocation5 + $0x1c4] ss:$8 sps:$4 sm:$0xff]  }
  0x87   : > { %v1431_v40 = vld [vmem:[#allocation5 + $0x1d0] ss:$8 sps:$4 sm:$0xff]   ;;  %v1439_v41 = vld [vmem:[#allocation5 + $0x1e4] ss:$8 sps:$4 sm:$0xff]   ;;  %v1440_v42 = vld [vmem:[#allocation5 + $0x260] ss:$8 sps:$4 sm:$0xff]  }
  0x88   : > { %1241 = vmatpush3.bf16.msra.mxu0 %v1348_v31  ;;  %v1419_v31 = vld [vmem:[#allocation5 + $0x1b0] ss:$8 sps:$4 sm:$0xff]   ;;  %v1448_v43 = vld [vmem:[#allocation5 + $0x274] ss:$8 sps:$4 sm:$0xff]  }
  0x89   : > { %904 = vmatprep.subr.bf16.mxu0 %v1354_v34  ;;  %878 = vmatpush1.bf16.msra.mxu1 %v1351_v36  ;;  %v1428_v34 = vld [vmem:[#allocation5 + $0x240] ss:$8 sps:$4 sm:$0xff]   ;;  %v1445_v45 = vld [vmem:[#allocation5 + $0x1f4] ss:$8 sps:$4 sm:$0xff]   ;;  %v1446_v46 = vld [vmem:[#allocation5 + $0x270] ss:$8 sps:$4 sm:$0xff]  }
  0x8a   : > { %879 = vmatprep.subr.bf16.mxu1 %v1355_v39  ;;  %v1425_v36 = vld [vmem:[#allocation5 + $0x1c0] ss:$8 sps:$4 sm:$0xff]   ;;  %v1442_v39 = vld [vmem:[#allocation5 + $0x264] ss:$8 sps:$4 sm:$0xff]  }
  0x8b   : > { %1243 = vmatmul.mubr.bf16.vlgmr.msra.gmra.mrb[0].mxu0 %v251_v50 }
  0x8c   : > { %905 = vmatpush1.bf16.msra.mxu0 %v1352_v48  ;;  %936 = vmatprep.mubr.bf16.mxu0 %v379_v49  ;;  %v381_v48 = vrot.slane %v1841_v32, 2  ;;  %v375_v49 = vrot.slane %v1841_v32, 1 }
  0x8d   : > { %880 = vmatpush1.bf16.msra.mxu1 %v1357_v44  ;;  %906 = vmatprep.subr.bf16.mxu0 %v1360_v51  ;;  %v1437_v44 = vld [vmem:[#allocation5 + $0x1e0] ss:$8 sps:$4 sm:$0xff]  }
  0x8e   : > { %881 = vmatprep.subr.bf16.mxu1 %v1361_v47  ;;  %v1443_v47 = vld [vmem:[#allocation5 + $0x1f0] ss:$8 sps:$4 sm:$0xff]  }
  0x90   : > { %907 = vmatpush1.bf16.msra.mxu0 %v1358_v54 }
  0x91   : > { %882 = vmatpush1.bf16.msra.mxu1 %v1363_v52  ;;  %908 = vmatprep.subr.bf16.mxu0 %v1366_v55 }
  0x92   : > { %883 = vmatprep.subr.bf16.mxu1 %v1367_v53 }
  0x94   : > { %909 = vmatpush1.bf16.msra.mxu0 %v1364_v58  ;;  %v988_v58 = vlaneseq }
  0x95   : > { %884 = vmatpush1.bf16.msra.mxu1 %v1369_v56  ;;  %910 = vmatprep.subr.bf16.mxu0 %v1372_v59 }
  0x96   : > { %885 = vmatprep.subr.bf16.mxu1 %v1373_v57  ;;  %v989_v59 = vshrl.u32 %v988_v58, 7 }
  0x98   : > { %911 = vmatpush1.bf16.msra.mxu0 %v1370_v62  ;;  %v994_v62 = vsub.s32 1, %v989_v59  ;;  %v990_v32 = vsub.s32 0, %v989_v59 }
  0x99   : > { %886 = vmatpush1.bf16.msra.mxu1 %v1375_v60  ;;  %912 = vmatprep.subr.bf16.mxu0 %v1378_v63 }
  0x9a   : > { %887 = vmatprep.subr.bf16.mxu1 %v1379_v61  ;;  %v986_v61 = vld [vmem:[%s1904_s2] sm:$0x3] }
  0x9c   : > { %913 = vmatpush1.bf16.msra.mxu0 %v1376_v2 }
  0x9d   : > { %888 = vmatpush1.bf16.msra.mxu1 %v1381_v0  ;;  %914 = vmatprep.subr.bf16.mxu0 %v1384_v3 }
  0x9e   : > { %889 = vmatprep.subr.bf16.mxu1 %v1385_v1 }
  0xa0   : > { %915 = vmatpush1.bf16.msra.mxu0 %v1382_v6 }
  0xa1   : > { %890 = vmatpush1.bf16.msra.mxu1 %v1387_v4  ;;  %916 = vmatprep.subr.bf16.mxu0 %v1390_v7  ;;  %v991_v4 = vrot.slane %v986_v61, %v990_v32 }
  0xa2   : > { %891 = vmatprep.subr.bf16.mxu1 %v1391_v5 }
  0xa4   : > { %917 = vmatpush1.bf16.msra.mxu0 %v1388_v10 }
  0xa5   : > { %892 = vmatpush1.bf16.msra.mxu1 %v1393_v8  ;;  %918 = vmatprep.subr.bf16.mxu0 %v1396_v11  ;;  %v995_v8 = vrot.slane %v986_v61, %v994_v62 }
  0xa6   : > { %893 = vmatprep.subr.bf16.mxu1 %v1397_v9 }
  0xa8   : > { %919 = vmatpush1.bf16.msra.mxu0 %v1394_v14 }
  0xa9   : > { %894 = vmatpush1.bf16.msra.mxu1 %v1399_v12  ;;  %920 = vmatprep.subr.bf16.mxu0 %v1403_v15 }
  0xaa   : > { %945 = vmatprep.subr.bf16.mxu1 %v1406_v13 }
  0xac   : > { %1213 = vmatmul.mubr.msk.bf16.vlgmr.msra.gmra.mrb[0].mxu1 %vm364_vm2, %v1837_v28  ;;  %921 = vmatpush1.bf16.msra.mxu0 %v1401_v18  ;;  %v1422_v28 = vld [vmem:[#allocation5 + $0x230] ss:$8 sps:$4 sm:$0xff]  }
  0xad   : > { %946 = vmatpush1.bf16.msra.mxu1 %v1404_v16  ;;  %977 = vmatprep.mubr.bf16.mxu1 %v1618_v21 }
  0xae   : > { %947 = vmatprep.subr.bf16.mxu1 %v1412_v17  ;;  %922 = vmatprep.subr.bf16.mxu0 %v1409_v19 }
  0xb0   : > { %923 = vmatpush1.bf16.msra.mxu0 %v1407_v23 }
  0xb1   : > { %948 = vmatpush1.bf16.msra.mxu1 %v1410_v20  ;;  %924 = vmatprep.subr.bf16.mxu0 %v1415_v24 }
  0xb2   : > { %949 = vmatprep.subr.bf16.mxu1 %v1418_v22 }
  0xb4   : > { %925 = vmatpush1.bf16.msra.mxu0 %v1413_v27 }
  0xb5   : > { %950 = vmatpush1.bf16.msra.mxu1 %v1416_v25  ;;  %926 = vmatprep.subr.bf16.mxu0 %v1421_v29 }
  0xb6   : > { %951 = vmatprep.subr.bf16.mxu1 %v1424_v26 }
  0xb8   : > { %927 = vmatpush1.bf16.msra.mxu0 %v1419_v31 }
  0xb9   : > { %952 = vmatpush1.bf16.msra.mxu1 %v1422_v28  ;;  %928 = vmatprep.subr.bf16.mxu0 %v1427_v33 }
  0xba   : > { %953 = vmatprep.subr.bf16.mxu1 %v1430_v30 }
  0xbc   : > { %929 = vmatpush1.bf16.msra.mxu0 %v1425_v36 }
  0xbd   : > { %954 = vmatpush1.bf16.msra.mxu1 %v1428_v34  ;;  %930 = vmatprep.subr.bf16.mxu0 %v1433_v37 }
  0xbe   : > { %955 = vmatprep.subr.bf16.mxu1 %v1436_v35 }
  0xc0   : > { %931 = vmatpush1.bf16.msra.mxu0 %v1431_v40 }
  0xc1   : > { %956 = vmatpush1.bf16.msra.mxu1 %v1434_v38  ;;  %932 = vmatprep.subr.bf16.mxu0 %v1439_v41 }
  0xc2   : > { %957 = vmatprep.subr.bf16.mxu1 %v1442_v39 }
  0xc4   : > { %933 = vmatpush1.bf16.msra.mxu0 %v1437_v44 }
  0xc5   : > { %958 = vmatpush1.bf16.msra.mxu1 %v1440_v42  ;;  %934 = vmatprep.subr.bf16.mxu0 %v1445_v45 }
  0xc6   : > { %959 = vmatprep.subr.bf16.mxu1 %v1448_v43 }
  0xc8   : > { %935 = vmatpush1.bf16.msra.mxu0 %v1443_v47 }
  0xc9   : > { %960 = vmatpush1.bf16.msra.mxu1 %v1446_v46 }
  0xcb   : > { %937 = vmatmul.mubr.bf16.vlgmr.msra.gmra.mrb[4].mxu0 %v375_v49 }
  0xcc   : > { %978 = vmatmul.mubr.bf16.vlgmr.msra.gmra.mrb[4].mxu1 %v381_v48 }
 0x15e   : > { %v350_v50 = vpop.f32.mrb[0].mxu0 }
 0x15f   : > { %v1244_v51 = vpop.f32.mrb[1].mxu0  ;;  %v1004_v13 = vrot.slane %v350_v50, %v990_v32 }
 0x160   : > { %v353_v52 = vpop.f32.mrb[2].mxu0 }
 0x161   : > { %v1245_v53 = vpop.f32.mrb[3].mxu0 }
 0x17f   : > { %v897_v54 = vpop.f32.mrb[0].mxu1 }
 0x180   : > { %v899_v55 = vpop.f32.mrb[1].mxu1 }
 0x181   : > { %v901_v56 = vpop.f32.mrb[2].mxu1 }
 0x182   : > { %v902_v57 = vpop.f32.mrb[3].mxu1 }
 0x19e   : > { %v938_v0 = vpop.f32.mrb[4].mxu0 }
 0x19f   : > { %v979_v60 = vpop.f32.mrb[4].mxu1  ;;  %v939_v2 = vadd.f32 %v938_v0, %v897_v54  ;;  %v940_v3 = vpop.f32.mrb[5].mxu0 }
 0x1a0   : > { %v981_v63 = vpop.f32.mrb[5].mxu1  ;;  %v941_v6 = vadd.f32 %v940_v3, %v899_v55  ;;  %v942_v7 = vpop.f32.mrb[6].mxu0 }
 0x1a1   : > { %v983_v1 = vpop.f32.mrb[6].mxu1  ;;  %v980_v9 = vadd.f32 %v979_v60, %v939_v2  ;;  %v943_v10 = vpop.f32.mrb[7].mxu0 }
 0x1a2   : > { %v984_v5 = vpop.f32.mrb[7].mxu1  ;;  %v982_v11 = vadd.f32 %v981_v63, %v941_v6 }
 0x1a3   : > { %v998_v12 = vadd.f32 %v991_v4, %v980_v9 }
 0x1a4   : > { %v999_v14 = vadd.f32 %v995_v8, %v982_v11 }
 0x1a5   : > { %1449 = vtanh.f32 %v998_v12 }
 0x1a6   : > { %v1005_v15 = vadd.f32 %v1004_v13, %v999_v14 }
 0x1a8   : > { %v1006_v16 = vmax.f32 %v1005_v15, 0.0 }
 0x1af   : > { %v1450_v17 = vpop.eup %1449 }
 0x1b0   : > { %v1007_v18 = vmul.f32 %v1450_v17, %v1006_v16 }
 0x1b2   : > { %v1008_v19 = vrot.slane %v1007_v18, 4 }
 0x1b4   : > { %v1009_v20 = vmax.f32 %v1007_v18, %v1008_v19 }
 0x1b6   : > { %v1010_v21 = vrot.slane %v1009_v20, 2 }
 0x1b8   : > { %v1011_v22 = vmax.f32 %v1009_v20, %v1010_v21 }
 0x1ba   : > { %v1012_v23 = vrot.slane %v1011_v22, 1 }
 0x1bc   : > { %v1013_v24 = vmax.f32 %v1011_v22, %v1012_v23 }
 0x1be   : > { %1014 = vst [vmem:[%s240_s6] sm:$0x1] %v1013_v24 }
 0x1bf   : > { %1550 = shalt.err (!%p1547_p2)
}
 0x1c0   : > { %s1551_s29 = scalar_lea.hbm %s1858_s13, 16  ;;  %s1555_s9 = scalar_lea.hbm %s1906_s4, 32 }
 0x1c1   : > { %p1552_p13 = scmp.ne.s32.totalorder %s1858_s13, %s1551_s29  ;;  %p1556_p4 = scmp.lt.u32.totalorder %s1858_s13, %s1906_s4 }
 0x1c2   : > { %p1557_p7 = scmp.lt.u32.totalorder %s1555_s9, %s1551_s29  ;;  %p1559_p11 = scmp.lt.u32.totalorder %s1551_s29, %s1858_s13 }
 0x1c3   : > { %p1553_p6 = pnand %p1552_p13, %p1920_p0 }
 0x1c4   : > { %p1558_p8 = por %p1557_p7, %p1556_p4 }
 0x1c5   : > { %p1554_p10 = pneg %p1553_p6 }
 0x1c6   : > { %p1560_p1 = por %p1559_p11, %p1558_p8 }
 0x1c8   : > { %p1561_p3 = pnand %p1560_p1, %p1554_p10 }
 0x1ca   : > { %1564 = shalt.err (!%p1561_p3)
}
 0x1cb   : > { %1256 = dma.vmem_to_hbm [thread:$0]  (%p1920_p0), %s1860_s25, 16, %s1858_s13, %s1016_s24  }
 0x1cc PF: > { %s1040_s23 = sand.u32 1, %s1595_s15   ;;  %p1921_p5 = scmp.ne.s32.totalorder %s1911_s22, 0 }
 0x1cd   : > { %p1922_p9 = scmp.ge.s32.totalorder %s1607_s18, 2  ;;  %s1041_s30 = scalar_lea.sflag [#allocation4], %s1040_s23 }
 0x1cf   : > { %p1270_p12 = pnand %p1922_p9, %p1921_p5 }
 0x1d1   : > { %1590 = dma.done.wait (!%p1270_p12), %s1041_s30, 16  }
 0x1d2   : > { %1592 = vsyncadd (!%p1270_p12), %s1041_s30, 4294967280  ;;  %p18_p2 = scmp.ge.s32.totalorder %s1755_s11, 4   ;;  %s1923_s15 = smov %s1599_s16 }
 0x1d3   : > { %s1924_s16 = smov %s1603_s17  ;;  %s1925_s17 = smov %s1764_s14 }
 0x1d4   : > { %s1926_s18 = smov %s1755_s11  ;;  %20 = sbr.rel (!%p18_p2) target bundleno = 6 (0x6), region = 89 }
 0x1db   :  { %1045 = vsyncpa [#allocation3], 1 }
 0x1dc   :  { %1047 = vsyncpa [#allocation3 + $0x1], 1 }
 0x1dd   :  { %1048 = vsyncpa [#allocation6], 1 }
 0x1de   :  { %1049 = vsyncpa [#allocation4], 1 }
 0x1df   :  { %1051 = vsyncpa [#allocation4 + $0x1], 1 }

</bundles_post_ra>
